<compile_context>
chip_gen: v7x
topology: tpu7x:2x2x1
jax: 0.10.0
libtpu: 0.0.40
codegen_flags: <defaults>
</compile_context>

<pallas_src>
import functools

import jax
import jax.numpy as jnp
from jax.experimental import pallas as pl
from jax.experimental.pallas import tpu as pltpu


def _round_up(x, m):
    return ((x + m - 1) // m) * m


# ----------------------------------------------------------------------------
# Parameter sampling + inverse affine map (pure JAX, jittable).
# ----------------------------------------------------------------------------
def _sample_theta(key, degrees, translate, scale):
    """Sample (angle, dx, dy, scale) and return the inverse affine map
    [t00, t01, t02, t10, t11, t12]: output normalized coords -> source
    normalized coords, matching F.affine_grid + grid_sample
    (align_corners=False, zero padding, bilinear)."""
    k_ang, k_tx, k_ty, k_sc = jax.random.split(key, 4)
    angle = jax.random.uniform(k_ang, (), jnp.float32,
                               float(degrees[0]), float(degrees[1]))
    if translate is not None:
        dx = jax.random.uniform(k_tx, (), jnp.float32,
                                -float(translate[0]), float(translate[0]))
        dy = jax.random.uniform(k_ty, (), jnp.float32,
                                -float(translate[1]), float(translate[1]))
    else:
        dx = jnp.float32(0.0)
        dy = jnp.float32(0.0)
    if scale is not None:
        sc = jax.random.uniform(k_sc, (), jnp.float32,
                                float(scale[0]), float(scale[1]))
    else:
        sc = jnp.float32(1.0)

    # TODO(synk): the reference module calls an external `affine(img, dx, dy,
    # scale, angle)` that is not shown; we follow torchvision RandomAffine
    # semantics where dx/dy are fractions of width/height, i.e. a normalized
    # translation of 2*dx / 2*dy under align_corners=False.
    a = angle * (jnp.pi / 180.0)
    c = jnp.cos(a)
    s = jnp.sin(a)
    inv = 1.0 / sc
    t00 = c * inv
    t01 = s * inv
    t10 = -s * inv
    t11 = c * inv
    txn = 2.0 * dx
    tyn = 2.0 * dy
    t02 = -(t00 * txn + t01 * tyn)
    t12 = -(t10 * txn + t11 * tyn)
    return jnp.stack([t00, t01, t02, t10, t11, t12]).astype(jnp.float32)


def _build_sampling_matrix(theta, H, W, hw_pad, dtype):
    """(hw_pad, hw_pad) matrix G (in `dtype`, typically bf16) with
    G[src_pixel, out_pixel] = bilinear weight (zero outside the image).
    Only 4 non-zeros per output column; built with 4 O(HW) scatter-adds in
    plain JAX (hoisted out of the kernel).  Built directly in the target dtype
    so no full-size f32 intermediate / cast pass is needed."""
    t00, t01, t02, t10, t11, t12 = (theta[i] for i in range(6))

    oy = jnp.arange(H, dtype=jnp.float32)[:, None]   # (H, 1)
    ox = jnp.arange(W, dtype=jnp.float32)[None, :]   # (1, W)
    xn = (2.0 * ox + 1.0) / W - 1.0
    yn = (2.0 * oy + 1.0) / H - 1.0

    sxn = t00 * xn + t01 * yn + t02                  # (H, W)
    syn = t10 * xn + t11 * yn + t12
    sx = ((sxn + 1.0) * W - 1.0) * 0.5
    sy = ((syn + 1.0) * H - 1.0) * 0.5

    x0f = jnp.floor(sx)
    y0f = jnp.floor(sy)
    wx1 = sx - x0f
    wx0 = 1.0 - wx1
    wy1 = sy - y0f
    wy0 = 1.0 - wy1
    x0 = x0f.astype(jnp.int32)
    y0 = y0f.astype(jnp.int32)

    out_idx = jnp.arange(H * W, dtype=jnp.int32)
    G = jnp.zeros((hw_pad, hw_pad), dtype)
    for dyc in (0, 1):
        for dxc in (0, 1):
            xi = x0 + dxc
            yi = y0 + dyc
            w = (wx1 if dxc else wx0) * (wy1 if dyc else wy0)
            valid = (xi >= 0) & (xi < W) & (yi >= 0) & (yi < H)
            w = jnp.where(valid, w, 0.0).reshape(-1)
            src = jnp.where(valid, yi * W + xi, 0).reshape(-1)
            G = G.at[src, out_idx].add(w.astype(dtype))
    return G


# ----------------------------------------------------------------------------
# Pallas kernels: tiled bf16 matmul  out[NC, HW] = img[NC, HW] @ G[HW, HW].
# ----------------------------------------------------------------------------
def _warp_kernel_single_k(img_ref, g_ref, out_ref):
    # Single contraction step (full-depth K tile): no accumulation needed.
    out_ref[...] = jnp.dot(img_ref[...], g_ref[...],
                           preferred_element_type=jnp.float32
                           ).astype(out_ref.dtype)


def _warp_kernel_accum_out(img_ref, g_ref, out_ref):
    # f32 output: accumulate directly into the resident out block (no scratch,
    # no final copy/cast pass).
    @pl.when(pl.program_id(2) == 0)
    def _():
        out_ref[...] = jnp.zeros_like(out_ref)

    out_ref[...] += jnp.dot(img_ref[...], g_ref[...],
                            preferred_element_type=jnp.float32)


def _warp_kernel_scratch(img_ref, g_ref, out_ref, acc_ref):
    # Non-f32 output with multiple K steps: f32 VMEM accumulator.
    @pl.when(pl.program_id(2) == 0)
    def _():
        acc_ref[...] = jnp.zeros_like(acc_ref)

    acc_ref[...] += jnp.dot(img_ref[...], g_ref[...],
                            preferred_element_type=jnp.float32)

    @pl.when(pl.program_id(2) == pl.num_programs(2) - 1)
    def _():
        out_ref[...] = acc_ref[...].astype(out_ref.dtype)


def _choose_tiles(NC, HW):
    """Static tile selection (all Python ints).

    * tile_k: contraction depth, as large as possible (full padded pixel axis
      for small images, 2048 otherwise) -> few grid steps, big DMAs.
    * tile_n: lane-dense output tile (128..512), divides tile_k and hw_pad.
    * tile_m: single M tile whenever NC <= 512 so G streams from HBM once.
    * megacore: if both parallel axes collapse to one tile, halve tile_n so a
      second TensorCore (v7x) gets work.
    """
    tile_k = min(2048, _round_up(HW, 128))
    hw_pad = _round_up(HW, tile_k)

    tile_n = 128
    for cand in (512, 256, 128):
        if tile_k % cand == 0:
            tile_n = cand
            break

    nc_pad = _round_up(NC, 16)
    if nc_pad <= 512:
        tile_m = nc_pad
    else:
        tile_m = 256
        nc_pad = _round_up(nc_pad, tile_m)

    if (nc_pad // tile_m) < 2 and (hw_pad // tile_n) < 2 and tile_n >= 256:
        tile_n //= 2
    return tile_m, tile_n, tile_k, nc_pad, hw_pad


def _warp_matmul(img_bf16, g_bf16, out_dtype, tile_m, tile_n, tile_k):
    M, K = img_bf16.shape
    _, N = g_bf16.shape
    gi, gj, gk = M // tile_m, N // tile_n, K // tile_k
    out_bytes = jnp.dtype(out_dtype).itemsize

    if gk == 1:
        kernel = _warp_kernel_single_k
        scratch = []
    elif jnp.dtype(out_dtype) == jnp.dtype(jnp.float32):
        kernel = _warp_kernel_accum_out
        scratch = []
    else:
        kernel = _warp_kernel_scratch
        scratch = [pltpu.VMEM((tile_m, tile_n), jnp.float32)]

    # Double-buffered working set; request it explicitly (v5e's default scoped
    # VMEM is ~16 MiB) but stay under ~48 MiB so it also fits v7x's 64 MiB.
    ws = (2 * tile_m * tile_k * 2        # img tiles (bf16)
          + 2 * tile_k * tile_n * 2      # G tiles (bf16)
          + 2 * tile_m * tile_n * out_bytes
          + tile_m * tile_n * 4)         # accumulator / headroom
    vmem_limit = int(min(max(2 * ws, 16 << 20), 48 << 20))

    cost = pl.CostEstimate(
        flops=2 * M * N * K,
        transcendentals=0,
        # G is re-streamed once per M tile (gi == 1 in the common case).
        bytes_accessed=M * K * 2 + K * N * 2 * gi + M * N * out_bytes)

    return pl.pallas_call(
        kernel,
        out_shape=jax.ShapeDtypeStruct((M, N), out_dtype),
        grid_spec=pltpu.PrefetchScalarGridSpec(
            num_scalar_prefetch=0,
            grid=(gi, gj, gk),
            in_specs=[
                pl.BlockSpec((tile_m, tile_k), lambda i, j, k: (i, k)),
                pl.BlockSpec((tile_k, tile_n), lambda i, j, k: (k, j)),
            ],
            out_specs=pl.BlockSpec((tile_m, tile_n), lambda i, j, k: (i, j)),
            scratch_shapes=scratch,
        ),
        compiler_params=pltpu.CompilerParams(
            dimension_semantics=("parallel", "parallel", "arbitrary"),
            vmem_limit_bytes=vmem_limit),
        cost_estimate=cost,
    )(img_bf16, g_bf16)


# ----------------------------------------------------------------------------
# Jitted forward: sample params, build G, pad to TPU-friendly shapes, warp.
# ----------------------------------------------------------------------------
@functools.partial(jax.jit, static_argnames=("degrees", "translate", "scale"))
def _random_affine(img, key, *, degrees, translate, scale):
    N, C, H, W = img.shape
    HW = H * W
    NC = N * C
    in_dtype = img.dtype
    floating = jnp.issubdtype(in_dtype, jnp.floating)
    out_dtype = in_dtype if floating else jnp.float32

    theta = _sample_theta(key, degrees, translate, scale)

    tile_m, tile_n, tile_k, nc_pad, hw_pad = _choose_tiles(NC, HW)

    # Sampling matrix built directly in bf16 (half the O(HW^2) footprint, no
    # extra cast pass).
    G = _build_sampling_matrix(theta, H, W, hw_pad, jnp.bfloat16)

    img_flat = img.reshape(NC, HW).astype(jnp.bfloat16)
    img_flat = jnp.pad(img_flat, ((0, nc_pad - NC), (0, hw_pad - HW)))

    out = _warp_matmul(img_flat, G, out_dtype, tile_m, tile_n, tile_k)
    out = out[:NC, :HW].reshape(N, C, H, W)

    if not floating:
        info = jnp.iinfo(in_dtype)
        out = jnp.clip(jnp.round(out), info.min, info.max).astype(in_dtype)
    return out


# ----------------------------------------------------------------------------
# RandomAffine module (same construction semantics as the PyTorch module).
# ----------------------------------------------------------------------------
class RandomAffine:
    def __init__(self, degrees, translate=None, scale=None):
        isnum = lambda x: isinstance(x, (int, float))
        if isnum(degrees):
            degrees = abs(degrees)
            degrees = (-degrees, degrees)
        if isnum(translate):
            assert translate >= 0
            translate = (translate, translate)
        if isnum(scale):
            assert scale > 0
            scale = (scale, 1) if scale < 1 else (1, scale)
        self.degrees = tuple(float(d) for d in degrees)
        self.translate = None if translate is None else tuple(float(t) for t in translate)
        self.scale = None if scale is None else tuple(float(s) for s in scale)

    def _affine(self, img, key):
        return _random_affine(img, key, degrees=self.degrees,
                              translate=self.translate, scale=self.scale)

    def __call__(self, *img, key):
        if len(img) == 0:
            raise ValueError
        elif len(img) == 1:
            return self._affine(img[0], key)
        # Same random transform applied to all inputs (concat then split).
        N = [i.shape[0] for i in img]
        cat = jnp.concatenate(img, axis=0)
        r = self._affine(cat, key)
        out, off = [], 0
        for n in N:
            out.append(r[off:off + n])
            off += n
        return tuple(out)


# ----------------------------------------------------------------------------
if __name__ == "__main__":
    import numpy as np

    key = jax.random.PRNGKey(0)
    k_img, k_params = jax.random.split(key)

    N, C, H, W = 2, 4, 16, 16
    x = jax.random.normal(k_img, (N, C, H, W), dtype=jnp.float32)

    aug = RandomAffine(degrees=30.0, translate=0.1, scale=0.9)
    y = jax.block_until_ready(aug(x, key=k_params))
    assert y.shape == (N, C, H, W) and y.dtype == x.dtype

    # f32 reference: same theta / same (unpadded) sparse sampling matrix
    # applied with a plain jnp matmul.  Loose tolerance covers the bf16 MXU
    # path (fine for augmentation).
    theta = _sample_theta(k_params, aug.degrees, aug.translate, aug.scale)
    G_ref = _build_sampling_matrix(theta, H, W, H * W, jnp.float32)
    ref = (x.reshape(N * C, H * W) @ G_ref).reshape(N, C, H, W)
    np.testing.assert_allclose(np.asarray(y), np.asarray(ref), atol=0.1)

    # Multi-input path: same transform applied to both tensors.
    y1, y2 = aug(x, x, key=k_params)
    jax.block_until_ready((y1, y2))
    assert y1.shape == x.shape and y2.shape == x.shape
    np.testing.assert_allclose(np.asarray(y1), np.asarray(y2), atol=1e-6)

    print("KERNEL_OK")
</pallas_src>

<mosaic_0001>
module attributes {stable_mosaic.version = 11 : i64} {
  func.func @_warp_kernel_single_k(%arg0: i32, %arg1: i32, %arg2: i32, %arg3: memref<16x256xbf16, #tpu.memory_space<vmem>>, %arg4: memref<256x128xbf16, #tpu.memory_space<vmem>>, %arg5: memref<16x128xf32, #tpu.memory_space<vmem>>) attributes {dimension_semantics = [#tpu.dimension_semantics<parallel>, #tpu.dimension_semantics<parallel>, #tpu.dimension_semantics<arbitrary>], iteration_bounds = array<i64: 1, 2, 1>, scalar_prefetch = 0 : i64, scratch_operands = 0 : i64, tpu.core_type = #tpu.core_type<tc>, window_params = [{transform_indices = @transform_0, window_bounds = array<i64: 16, 256>}, {transform_indices = @transform_1, window_bounds = array<i64: 256, 128>}, {transform_indices = @transform_2, window_bounds = array<i64: 16, 128>}]} {
    %c0 = arith.constant 0 : index
    %c0_0 = arith.constant 0 : index
    %0 = vector.load %arg3[%c0, %c0_0] : memref<16x256xbf16, #tpu.memory_space<vmem>>, vector<16x256xbf16>
    %c0_1 = arith.constant 0 : index
    %c0_2 = arith.constant 0 : index
    %1 = vector.load %arg4[%c0_1, %c0_2] : memref<256x128xbf16, #tpu.memory_space<vmem>>, vector<256x128xbf16>
    %cst = arith.constant dense<0.000000e+00> : vector<16x128xf32>
    %2 = tpu.matmul %0, %1, %cst {dimension_numbers = #tpu.dot_dimension_numbers<[1], [0], [0], [1], [0, 0, 1, 1], [], []>} : vector<16x256xbf16>, vector<256x128xbf16>, vector<16x128xf32> -> vector<16x128xf32>
    %c0_3 = arith.constant 0 : index
    %c0_4 = arith.constant 0 : index
    %3 = vector.load %arg5[%c0_3, %c0_4] : memref<16x128xf32, #tpu.memory_space<vmem>>, vector<16x128xf32>
    tpu.vector_store %arg5[%c0_3, %c0_4], %2 {strides = array<i32>} : memref<16x128xf32, #tpu.memory_space<vmem>>, vector<16x128xf32>,
    return
  }
  func.func @transform_0(%arg0: i32, %arg1: i32, %arg2: i32) -> (i32, i32) {
    %c0_i32 = arith.constant 0 : i32
    return %arg0, %arg2 : i32, i32
  }
  func.func @transform_1(%arg0: i32, %arg1: i32, %arg2: i32) -> (i32, i32) {
    %c0_i32 = arith.constant 0 : i32
    return %arg2, %arg1 : i32, i32
  }
  func.func @transform_2(%arg0: i32, %arg1: i32, %arg2: i32) -> (i32, i32) {
    %c0_i32 = arith.constant 0 : i32
    return %arg0, %arg1 : i32, i32
  }
}

</mosaic_0001>

<bundles_post_ra>
// kernel: _random_affine.1
= control target key start
LH: loop header
LB: loop body
LE: loop exit
PB: predicated region body
PF: predicated region fallthrough
CT: control target
= control target key end

     0   :  { %s865_s9 = smov 0   ;;  %s867_s10 = smov 0   ;;  %s1033_s0 = inlined_call_operand.vmem [shape: bf16[16,256], index: 0, kind: input, shape index: {}]   ;;  %s1034_s1 = inlined_call_operand.vmem [shape: bf16[256,256], index: 1, kind: input, shape index: {}]   ;;  %s1035_s2 = inlined_call_operand.vmem [shape: f32[16,256], index: 2, kind: output, shape index: {}]  }
   0x1   :  { %s869_s11 = smov 0   ;;  %s871_s12 = smov 0  }
   0x2   :  { %s873_s13 = smov 0  }
   0x3 LB: > { %s27_s14 = sadd.s32 1, %s844_s12  ;;  %s697_s15 = sadd.s32 4294967295, %s848_s13   ;;  %s848_s13 = sphi %s873_s13, %s12_s13   ;;  %s844_s12 = sphi %s871_s12, %s1040_s12   ;;  %s840_s11 = sphi %s869_s11, %s1039_s11   ;;  %s836_s10 = sphi %s867_s10, %s1038_s10   ;;  %s832_s9 = sphi %s865_s9, %s1037_s9  }
   0x4   : > { %p29_p0 = scmp.ge.s32.totalorder %s27_s14, 2  ;;  %p75_p1 = scmp.ne.s32.totalorder %s836_s10, %s832_s9 }
   0x5   : > { %p76_p2 = scmp.eq.s32.totalorder %s848_s13, 0  ;;  %p107_p4 = scmp.eq.s32.totalorder %s697_s15, 1 }
   0x6   : > { %s1042_s14 = smov (%p29_p0, %s27_s14), 0  ;;  %s68_s17 = sadd.s32 1, %s836_s10 }
   0x7   : > { %p77_p3 = por %p76_p2, %p75_p1  ;;  %s64_s16 = ssub.s32 %s844_s12, %s1042_s14 }
   0x8   : > { %p66_p5 = scmp.eq.s32.totalorder %s64_s16, 0  ;;  %p900_p6 = por %p107_p4, %p75_p1 }
   0x9   : > { %p701_p7 = scmp.ge.s32.totalorder %s848_s13, 2 }
   0xa   : > { %s905_s19 = scalar_select %p66_p5, %s836_s10, %s68_s17  }
   0xb   : > { %144 = sbr.rel (%p701_p7) target bundleno = 43 (0x2b), region = 20 }
  0x12   : > { %147 = sbr.rel (!%p77_p3) target bundleno = 43 (0x2b), region = 24  ;;  %s149_s20 = sand.u32 (%p77_p3), 1, %s836_s10  }
  0x13   : > { %s703_s21 = sshll.u32 (%p77_p3), %s844_s12, 2  ;;  %s702_s22 = sshll.u32 (%p77_p3), %s149_s20, 7 }
  0x14   : > { %s913_s25 = scalar_lea.vmem (%p77_p3), %s1034_s1, %s703_s21  ;;  %s917_s26 = scalar_lea.vmem (%p77_p3), [#allocation2], %s702_s22 }
  0x15   : > { %v172_v0 = vld [vmem:[%s913_s25] sm:$0xf] (%p77_p3)  ;;  %v174_v1 = vld [vmem:[%s913_s25 + $0x8] sm:$0xf] (%p77_p3)  ;;  %v176_v2 = vld [vmem:[%s913_s25 + $0x10] sm:$0xf] (%p77_p3) }
  0x16   : > { %173 = vst [vmem:[%s917_s26] sm:$0xf] (%p77_p3), %v172_v0  ;;  %175 = vst [vmem:[%s917_s26 + $0x4] sm:$0xf] (%p77_p3), %v174_v1  ;;  %v178_v3 = vld [vmem:[%s913_s25 + $0x18] sm:$0xf] (%p77_p3) }
  0x17   : > { %v180_v4 = vld [vmem:[%s913_s25 + $0x20] sm:$0xf] (%p77_p3)  ;;  %177 = vst [vmem:[%s917_s26 + $0x8] sm:$0xf] (%p77_p3), %v176_v2  ;;  %179 = vst [vmem:[%s917_s26 + $0xc] sm:$0xf] (%p77_p3), %v178_v3 }
  0x18   : > { %181 = vst [vmem:[%s917_s26 + $0x10] sm:$0xf] (%p77_p3), %v180_v4  ;;  %v182_v5 = vld [vmem:[%s913_s25 + $0x28] sm:$0xf] (%p77_p3)  ;;  %v184_v6 = vld [vmem:[%s913_s25 + $0x30] sm:$0xf] (%p77_p3) }
  0x19   : > { %v186_v7 = vld [vmem:[%s913_s25 + $0x38] sm:$0xf]  ;;  %183 = vst [vmem:[%s917_s26 + $0x14] sm:$0xf] %v182_v5  ;;  %185 = vst [vmem:[%s917_s26 + $0x18] sm:$0xf] %v184_v6 }
  0x1a   : > { %187 = vst [vmem:[%s917_s26 + $0x1c] sm:$0xf] %v186_v7  ;;  %v188_v8 = vld [vmem:[%s913_s25 + $0x40] sm:$0xf]  ;;  %v190_v9 = vld [vmem:[%s913_s25 + $0x48] sm:$0xf] }
  0x1b   : > { %v192_v10 = vld [vmem:[%s913_s25 + $0x50] sm:$0xf]  ;;  %189 = vst [vmem:[%s917_s26 + $0x20] sm:$0xf] %v188_v8  ;;  %191 = vst [vmem:[%s917_s26 + $0x24] sm:$0xf] %v190_v9 }
  0x1c   : > { %193 = vst [vmem:[%s917_s26 + $0x28] sm:$0xf] %v192_v10  ;;  %v194_v11 = vld [vmem:[%s913_s25 + $0x58] sm:$0xf]  ;;  %v196_v12 = vld [vmem:[%s913_s25 + $0x60] sm:$0xf] }
  0x1d   : > { %v198_v13 = vld [vmem:[%s913_s25 + $0x68] sm:$0xf]  ;;  %195 = vst [vmem:[%s917_s26 + $0x2c] sm:$0xf] %v194_v11  ;;  %197 = vst [vmem:[%s917_s26 + $0x30] sm:$0xf] %v196_v12 }
  0x1e   : > { %199 = vst [vmem:[%s917_s26 + $0x34] sm:$0xf] %v198_v13  ;;  %v200_v14 = vld [vmem:[%s913_s25 + $0x70] sm:$0xf]  ;;  %v202_v15 = vld [vmem:[%s913_s25 + $0x78] sm:$0xf] }
  0x1f   : > { %v204_v16 = vld [vmem:[%s913_s25 + $0x80] sm:$0xf]  ;;  %201 = vst [vmem:[%s917_s26 + $0x38] sm:$0xf] %v200_v14  ;;  %203 = vst [vmem:[%s917_s26 + $0x3c] sm:$0xf] %v202_v15 }
  0x20   : > { %205 = vst [vmem:[%s917_s26 + $0x40] sm:$0xf] %v204_v16  ;;  %v206_v17 = vld [vmem:[%s913_s25 + $0x88] sm:$0xf]  ;;  %v208_v18 = vld [vmem:[%s913_s25 + $0x90] sm:$0xf] }
  0x21   : > { %v210_v19 = vld [vmem:[%s913_s25 + $0x98] sm:$0xf]  ;;  %207 = vst [vmem:[%s917_s26 + $0x44] sm:$0xf] %v206_v17  ;;  %209 = vst [vmem:[%s917_s26 + $0x48] sm:$0xf] %v208_v18 }
  0x22   : > { %211 = vst [vmem:[%s917_s26 + $0x4c] sm:$0xf] %v210_v19  ;;  %v212_v20 = vld [vmem:[%s913_s25 + $0xa0] sm:$0xf]  ;;  %v214_v21 = vld [vmem:[%s913_s25 + $0xa8] sm:$0xf] }
  0x23   : > { %v216_v22 = vld [vmem:[%s913_s25 + $0xb0] sm:$0xf]  ;;  %213 = vst [vmem:[%s917_s26 + $0x50] sm:$0xf] %v212_v20  ;;  %215 = vst [vmem:[%s917_s26 + $0x54] sm:$0xf] %v214_v21 }
  0x24   : > { %217 = vst [vmem:[%s917_s26 + $0x58] sm:$0xf] %v216_v22  ;;  %v218_v23 = vld [vmem:[%s913_s25 + $0xb8] sm:$0xf]  ;;  %v220_v24 = vld [vmem:[%s913_s25 + $0xc0] sm:$0xf] }
  0x25   : > { %v222_v25 = vld [vmem:[%s913_s25 + $0xc8] sm:$0xf]  ;;  %219 = vst [vmem:[%s917_s26 + $0x5c] sm:$0xf] %v218_v23  ;;  %221 = vst [vmem:[%s917_s26 + $0x60] sm:$0xf] %v220_v24 }
  0x26   : > { %223 = vst [vmem:[%s917_s26 + $0x64] sm:$0xf] %v222_v25  ;;  %v224_v26 = vld [vmem:[%s913_s25 + $0xd0] sm:$0xf]  ;;  %v226_v27 = vld [vmem:[%s913_s25 + $0xd8] sm:$0xf] }
  0x27   : > { %v228_v28 = vld [vmem:[%s913_s25 + $0xe0] sm:$0xf]  ;;  %225 = vst [vmem:[%s917_s26 + $0x68] sm:$0xf] %v224_v26  ;;  %227 = vst [vmem:[%s917_s26 + $0x6c] sm:$0xf] %v226_v27 }
  0x28   : > { %229 = vst [vmem:[%s917_s26 + $0x70] sm:$0xf] %v228_v28  ;;  %v230_v29 = vld [vmem:[%s913_s25 + $0xe8] sm:$0xf]  ;;  %v232_v30 = vld [vmem:[%s913_s25 + $0xf0] sm:$0xf] }
  0x29   : > { %v234_v31 = vld [vmem:[%s913_s25 + $0xf8] sm:$0xf]  ;;  %231 = vst [vmem:[%s917_s26 + $0x74] sm:$0xf] %v230_v29  ;;  %233 = vst [vmem:[%s917_s26 + $0x78] sm:$0xf] %v232_v30 }
  0x2a   : > { %235 = vst [vmem:[%s917_s26 + $0x7c] sm:$0xf] %v234_v31 }
  0x2b PF: > { %p704_p8 = scmp.ge.s32.totalorder %s848_s13, 1  ;;  %p321_p9 = scmp.lt.s32.totalorder %s848_s13, 3 }
  0x2d   : > { %p322_p10 = pnand %p704_p8, %p321_p9 }
  0x2e   : > { %s328_s27 = sand.u32 (!%p322_p10), 1, %s832_s9   ;;  %v809_v32 = vld [vmem:[%s1033_s0 + $0x4] ss:$8 sps:$4 sm:$0xff] (!%p322_p10)   ;;  %v807_v49 = vld [vmem:[%s1033_s0] ss:$8 sps:$4 sm:$0xff] (!%p322_p10)  }
  0x2f   : > { %325 = sbr.rel (%p322_p10) target bundleno = 308 (0x134), region = 65  ;;  %s705_s28 = sshll.u32 (!%p322_p10), %s328_s27, 7  ;;  %545 = vmatprep.mubr.bf16.mxu0 (!%p322_p10), %v809_v32 }
  0x30   : > { %s989_s3 = scalar_lea.vmem (!%p322_p10), [#allocation2], %s705_s28  ;;  %s706_s6 = sshll.u32 (!%p322_p10), %s328_s27, 4 }
  0x31   : > { %v791_v33 = vld [vmem:[%s989_s3 + $0x40] sm:$0xff] (!%p322_p10)   ;;  %v793_v35 = vld [vmem:[%s989_s3 + $0x48] sm:$0xff] (!%p322_p10)   ;;  %v795_v37 = vld [vmem:[%s989_s3 + $0x50] sm:$0xff] (!%p322_p10)   ;;  %s357_s7 = scalar_lea.vmem (!%p322_p10), [#allocation3], %s706_s6 }
  0x32   : > { %v792_v34 = vld [vmem:[%s989_s3] sm:$0xff] (!%p322_p10)   ;;  %729 = vmatprep.subr.bf16.mxu0 (!%p322_p10), %v791_v33  ;;  %v794_v36 = vld [vmem:[%s989_s3 + $0x8] sm:$0xff] (!%p322_p10)   ;;  %v796_v38 = vld [vmem:[%s989_s3 + $0x10] sm:$0xff] (!%p322_p10)  }
  0x33   : > { %730 = vmatpush3.bf16.msra.mxu0 (!%p322_p10), %v792_v34  ;;  %v797_v39 = vld [vmem:[%s989_s3 + $0x58] sm:$0xff] (!%p322_p10)   ;;  %v799_v41 = vld [vmem:[%s989_s3 + $0x60] sm:$0xff] (!%p322_p10)   ;;  %v801_v43 = vld [vmem:[%s989_s3 + $0x68] sm:$0xff] (!%p322_p10)  }
  0x34   : > { %731 = vmatprep.subr.bf16.mxu0 (!%p322_p10), %v793_v35  ;;  %v798_v40 = vld [vmem:[%s989_s3 + $0x18] sm:$0xff] (!%p322_p10)   ;;  %v800_v42 = vld [vmem:[%s989_s3 + $0x20] sm:$0xff] (!%p322_p10)   ;;  %v802_v44 = vld [vmem:[%s989_s3 + $0x28] sm:$0xff] (!%p322_p10)  }
  0x35   : > { %v803_v45 = vld [vmem:[%s989_s3 + $0x70] sm:$0xff] (!%p322_p10)   ;;  %v805_v47 = vld [vmem:[%s989_s3 + $0x78] sm:$0xff] (!%p322_p10)  }
  0x36   : > { %v804_v46 = vld [vmem:[%s989_s3 + $0x30] sm:$0xff]   ;;  %v806_v48 = vld [vmem:[%s989_s3 + $0x38] sm:$0xff]   ;;  %s726_s8 = sshll.u32 (%p900_p6), %s840_s11, 3 }
  0x37   : > { %732 = vmatpush3.bf16.msra.mxu0 %v794_v36  ;;  %s567_s9 = scalar_lea.vmem (%p900_p6), %s1035_s2, %s726_s8 }
  0x38   : > { %733 = vmatprep.subr.bf16.mxu0 %v795_v37 }
  0x3b   : > { %734 = vmatpush3.bf16.msra.mxu0 %v796_v38 }
  0x3c   : > { %735 = vmatprep.subr.bf16.mxu0 %v797_v39 }
  0x3f   : > { %736 = vmatpush3.bf16.msra.mxu0 %v798_v40 }
  0x40   : > { %737 = vmatprep.subr.bf16.mxu0 %v799_v41 }
  0x43   : > { %738 = vmatpush3.bf16.msra.mxu0 %v800_v42 }
  0x44   : > { %739 = vmatprep.subr.bf16.mxu0 %v801_v43 }
  0x47   : > { %740 = vmatpush3.bf16.msra.mxu0 %v802_v44 }
  0x48   : > { %741 = vmatprep.subr.bf16.mxu0 %v803_v45 }
  0x4b   : > { %742 = vmatpush3.bf16.msra.mxu0 %v804_v46 }
  0x4c   : > { %743 = vmatprep.subr.bf16.mxu0 %v805_v47 }
  0x4f   : > { %744 = vmatpush3.bf16.msra.mxu0 %v806_v48 }
  0x52   : > { %546 = vmatmul.mubr.bf16.vlgmr.msra.gmra.mrb[0].mxu0 %v807_v49 }
 0x125   : > { %v745_v50 = vpop.f32.mrb[0].mxu0  ;;  %562 = sbr.rel (!%p900_p6) target bundleno = 308 (0x134), region = 73 }
 0x126   : > { %v746_v51 = vpop.f32.mrb[1].mxu0 }
 0x127   : > { %v747_v52 = vadd.f32 %v746_v51, %v745_v50  ;;  %v748_v53 = vpop.f32.mrb[2].mxu0 }
 0x128   : > { %v749_v54 = vpop.f32.mrb[3].mxu0 }
 0x129   : > { %554 = vst [vmem:[%s357_s7] sm:$0xff] %v747_v52  ;;  %v750_v55 = vadd.f32 %v749_v54, %v748_v53 }
 0x12b   : > { %555 = vst [vmem:[%s357_s7 + $0x8] sm:$0xff] %v750_v55 }
 0x130   : > { %v597_v56 = vld [vmem:[%s357_s7] sm:$0xff] }
 0x131   : > { %598 = vst [vmem:[%s567_s9] sm:$0xff] %v597_v56 }
 0x132   : > { %v599_v57 = vld [vmem:[%s357_s7 + $0x8] sm:$0xff] }
 0x133   : > { %600 = vst [vmem:[%s567_s9 + $0x10] sm:$0xff] %v599_v57 }
 0x134 PF: > { %s12_s13 = sadd.s32 1, %s848_s13   ;;  %s1037_s9 = smov %s836_s10 }
 0x135   : > { %p9_p11 = scmp.ge.s32.totalorder %s12_s13, 4   ;;  %s1038_s10 = smov %s905_s19 }
 0x136   : > { %s1039_s11 = smov %s844_s12  ;;  %s1040_s12 = smov %s1042_s14 }
 0x137   :  { %11 = sbr.rel (!%p9_p11) target bundleno = 3 (0x3), region = 145 }

</bundles_post_ra>
